<compile_context>
chip_gen: v7x
topology: tpu7x:2x2x1
jax: 0.10.0
libtpu: 0.0.40
codegen_flags: <defaults>
</compile_context>

<pallas_src>
import math
import functools

import jax
import jax.numpy as jnp
from jax.experimental import pallas as pl
from jax.experimental.pallas import tpu as pltpu

_NEG_INF = -1e30                      # finite "minus infinity" -> no NaN rows
_VMEM_LIMIT = 32 * 1024 * 1024        # >= scoped default on every generation


def _round_up(x, m):
    return (x + m - 1) // m * m


def _pad2d(x, rows, cols):
    r, c = x.shape
    if r == rows and c == cols:
        return x
    return jnp.pad(x, ((0, rows - r), (0, cols - c)))


# ----------------------------- tiled linear ---------------------------------

def _matmul_kernel(x_ref, w_ref, b_ref, o_ref, acc_ref):
    @pl.when(pl.program_id(2) == 0)
    def _():
        acc_ref[...] = jnp.zeros_like(acc_ref)

    acc_ref[...] += jnp.dot(x_ref[...], w_ref[...],
                            preferred_element_type=jnp.float32)

    @pl.when(pl.program_id(2) == pl.num_programs(2) - 1)
    def _():
        o_ref[...] = (acc_ref[...] + b_ref[...]).astype(o_ref.dtype)


def linear(x, w, b, out_dtype=jnp.bfloat16, tm=256, tn=256, tk=1024):
    """x: (M, K) bf16, w: (K, N) bf16 (stored (in, out)), b: (N,) f32."""
    M, K = x.shape
    N = w.shape[1]
    tm = min(tm, _round_up(M, 8))
    tn = min(tn, _round_up(N, 128))
    tk = min(tk, _round_up(K, 128))
    Mp, Kp, Np = _round_up(M, tm), _round_up(K, tk), _round_up(N, tn)

    xp = _pad2d(x, Mp, Kp)
    wp = _pad2d(w, Kp, Np)
    bp = _pad2d(b.reshape(1, N).astype(jnp.float32), 1, Np)

    out = pl.pallas_call(
        _matmul_kernel,
        grid=(Mp // tm, Np // tn, Kp // tk),
        in_specs=[
            pl.BlockSpec((tm, tk), lambda i, j, k: (i, k)),
            pl.BlockSpec((tk, tn), lambda i, j, k: (k, j)),
            pl.BlockSpec((1, tn), lambda i, j, k: (0, j)),
        ],
        out_specs=pl.BlockSpec((tm, tn), lambda i, j, k: (i, j)),
        out_shape=jax.ShapeDtypeStruct((Mp, Np), out_dtype),
        scratch_shapes=[pltpu.VMEM((tm, tn), jnp.float32)],
        compiler_params=pltpu.CompilerParams(
            dimension_semantics=("parallel", "parallel", "arbitrary"),
            vmem_limit_bytes=_VMEM_LIMIT),
    )(xp, wp, bp)
    if Mp != M or Np != N:
        out = out[:M, :N]
    return out


# -------------------- linear + residual + LayerNorm fused -------------------

def _linear_res_ln_kernel(x_ref, w_ref, b_ref, r_ref, g_ref, bt_ref,
                          o_ref, acc_ref, *, eps):
    @pl.when(pl.program_id(1) == 0)
    def _():
        acc_ref[...] = jnp.zeros_like(acc_ref)

    acc_ref[...] += jnp.dot(x_ref[...], w_ref[...],
                            preferred_element_type=jnp.float32)

    @pl.when(pl.program_id(1) == pl.num_programs(1) - 1)
    def _():
        y = acc_ref[...] + b_ref[...] + r_ref[...].astype(jnp.float32)
        mu = jnp.mean(y, axis=-1, keepdims=True)
        yc = y - mu
        var = jnp.mean(yc * yc, axis=-1, keepdims=True)
        o_ref[...] = (yc * jax.lax.rsqrt(var + eps) * g_ref[...]
                      + bt_ref[...]).astype(o_ref.dtype)


def linear_res_ln(x, w, b, residual, g, beta, eps=1e-5, tm=256, tk=512):
    """LN(residual + x @ w + b); output width == full E (LN needs whole rows)."""
    M, K = x.shape
    E = w.shape[1]
    tm = min(tm, _round_up(M, 8))
    tk = min(tk, _round_up(K, 128))
    Mp, Kp = _round_up(M, tm), _round_up(K, tk)

    xp = _pad2d(x, Mp, Kp)
    wp = _pad2d(w, Kp, E)
    rp = _pad2d(residual, Mp, E)
    bp = b.reshape(1, E).astype(jnp.float32)
    gp = g.reshape(1, E).astype(jnp.float32)
    btp = beta.reshape(1, E).astype(jnp.float32)

    out = pl.pallas_call(
        functools.partial(_linear_res_ln_kernel, eps=eps),
        grid=(Mp // tm, Kp // tk),
        in_specs=[
            pl.BlockSpec((tm, tk), lambda i, k: (i, k)),
            pl.BlockSpec((tk, E), lambda i, k: (k, 0)),
            pl.BlockSpec((1, E), lambda i, k: (0, 0)),
            pl.BlockSpec((tm, E), lambda i, k: (i, 0)),
            pl.BlockSpec((1, E), lambda i, k: (0, 0)),
            pl.BlockSpec((1, E), lambda i, k: (0, 0)),
        ],
        out_specs=pl.BlockSpec((tm, E), lambda i, k: (i, 0)),
        out_shape=jax.ShapeDtypeStruct((Mp, E), jnp.bfloat16),
        scratch_shapes=[pltpu.VMEM((tm, E), jnp.float32)],
        compiler_params=pltpu.CompilerParams(
            dimension_semantics=("parallel", "arbitrary"),
            vmem_limit_bytes=_VMEM_LIMIT),
    )(xp, wp, bp, rp, gp, btp)
    return out[:M] if Mp != M else out


# ----------------- fused FFN (F-tiled) + residual + LayerNorm ----------------

def _ffn_res_ln_kernel(x_ref, w1_ref, b1_ref, w2_ref, b2_ref, g_ref, bt_ref,
                       o_ref, acc_ref, *, eps):
    @pl.when(pl.program_id(1) == 0)
    def _():
        acc_ref[...] = jnp.zeros_like(acc_ref)

    h = jnp.dot(x_ref[...], w1_ref[...],
                preferred_element_type=jnp.float32) + b1_ref[...]
    h = jnp.maximum(h, 0.0)                         # relu (nn.Transformer default)
    acc_ref[...] += jnp.dot(h.astype(jnp.bfloat16), w2_ref[...],
                            preferred_element_type=jnp.float32)

    @pl.when(pl.program_id(1) == pl.num_programs(1) - 1)
    def _():
        y = acc_ref[...] + b2_ref[...] + x_ref[...].astype(jnp.float32)  # residual
        mu = jnp.mean(y, axis=-1, keepdims=True)
        yc = y - mu
        var = jnp.mean(yc * yc, axis=-1, keepdims=True)
        o_ref[...] = (yc * jax.lax.rsqrt(var + eps) * g_ref[...]
                      + bt_ref[...]).astype(o_ref.dtype)


def ffn_res_ln(x, w1, b1, w2, b2, g, beta, eps=1e-5, tm=256, tf=512):
    """LN(x + relu(x @ W1 + b1) @ W2 + b2); hidden dim F tiled on the grid."""
    M, E = x.shape
    F = w1.shape[1]
    tm = min(tm, _round_up(M, 8))
    tf = min(tf, _round_up(F, 128))
    Mp, Fp = _round_up(M, tm), _round_up(F, tf)

    xp = _pad2d(x, Mp, E)
    w1p = _pad2d(w1, E, Fp)
    b1p = _pad2d(b1.reshape(1, F).astype(jnp.float32), 1, Fp)
    w2p = _pad2d(w2, Fp, E)
    b2p = b2.reshape(1, E).astype(jnp.float32)
    gp = g.reshape(1, E).astype(jnp.float32)
    btp = beta.reshape(1, E).astype(jnp.float32)

    out = pl.pallas_call(
        functools.partial(_ffn_res_ln_kernel, eps=eps),
        grid=(Mp // tm, Fp // tf),
        in_specs=[
            pl.BlockSpec((tm, E), lambda i, f: (i, 0)),
            pl.BlockSpec((E, tf), lambda i, f: (0, f)),
            pl.BlockSpec((1, tf), lambda i, f: (0, f)),
            pl.BlockSpec((tf, E), lambda i, f: (f, 0)),
            pl.BlockSpec((1, E), lambda i, f: (0, 0)),
            pl.BlockSpec((1, E), lambda i, f: (0, 0)),
            pl.BlockSpec((1, E), lambda i, f: (0, 0)),
        ],
        out_specs=pl.BlockSpec((tm, E), lambda i, f: (i, 0)),
        out_shape=jax.ShapeDtypeStruct((Mp, E), jnp.bfloat16),
        scratch_shapes=[pltpu.VMEM((tm, E), jnp.float32)],
        compiler_params=pltpu.CompilerParams(
            dimension_semantics=("parallel", "arbitrary"),
            vmem_limit_bytes=_VMEM_LIMIT),
    )(xp, w1p, b1p, w2p, b2p, gp, btp)
    return out[:M] if Mp != M else out


# --------------------------- standalone LayerNorm ----------------------------

def _ln_kernel(x_ref, g_ref, b_ref, o_ref, *, eps):
    x = x_ref[...].astype(jnp.float32)
    mu = jnp.mean(x, axis=-1, keepdims=True)
    xc = x - mu
    var = jnp.mean(xc * xc, axis=-1, keepdims=True)
    o_ref[...] = (xc * jax.lax.rsqrt(var + eps) * g_ref[...]
                  + b_ref[...]).astype(o_ref.dtype)


def layer_norm(x2d, g, b, eps=1e-5, tm=512):
    M, E = x2d.shape
    tm = min(tm, _round_up(M, 8))
    Mp = _round_up(M, tm)
    xp = _pad2d(x2d, Mp, E)
    out = pl.pallas_call(
        functools.partial(_ln_kernel, eps=eps),
        grid=(Mp // tm,),
        in_specs=[pl.BlockSpec((tm, E), lambda i: (i, 0)),
                  pl.BlockSpec((1, E), lambda i: (0, 0)),
                  pl.BlockSpec((1, E), lambda i: (0, 0))],
        out_specs=pl.BlockSpec((tm, E), lambda i: (i, 0)),
        out_shape=jax.ShapeDtypeStruct((Mp, E), jnp.bfloat16),
        compiler_params=pltpu.CompilerParams(
            dimension_semantics=("parallel",),
            vmem_limit_bytes=_VMEM_LIMIT),
    )(xp, g.reshape(1, E).astype(jnp.float32), b.reshape(1, E).astype(jnp.float32))
    return out[:M] if Mp != M else out


# ------------------------------- attention -----------------------------------

def _attn_kernel(q_ref, k_ref, v_ref, am_ref, pm_ref, o_ref):
    # One (batch, head, q-tile) per grid step; scale already folded into Wq.
    q = q_ref[0, 0]                                   # (tq, Dh) bf16
    k = k_ref[0, 0]                                   # (Tk, Dh) bf16
    v = v_ref[0, 0]                                   # (Tk, Dh) bf16
    s = jax.lax.dot_general(q, k, (((1,), (1,)), ((), ())),
                            preferred_element_type=jnp.float32)   # (tq, Tk)
    s = s + am_ref[...] + pm_ref[0]                   # finite -1e30 masking
    m = jnp.max(s, axis=-1, keepdims=True)
    p = jnp.exp(s - m)
    l = jnp.sum(p, axis=-1, keepdims=True)
    o = jnp.dot(p.astype(jnp.bfloat16), v, preferred_element_type=jnp.float32)
    o = o * pl.reciprocal(l, approx=True)             # normalize small (tq, Dh)
    o_ref[0, 0] = o.astype(o_ref.dtype)


def sdpa(q, k, v, attn_bias, pad_bias, tq=256):
    """q/k/v: (N, H, T, Dh) bf16, attn_bias: (Tq, Tk) f32, pad_bias: (N,1,Tk) f32."""
    # TODO(synk): flash-style online-softmax Tk tiling for long key sequences.
    N, H, Tq, Dh = q.shape
    Tk = k.shape[2]
    tq = min(tq, _round_up(Tq, 8))
    Tqp = _round_up(Tq, tq)
    if Tqp != Tq:
        q = jnp.pad(q, ((0, 0), (0, 0), (0, Tqp - Tq), (0, 0)))
        attn_bias = jnp.pad(attn_bias, ((0, Tqp - Tq), (0, 0)))

    out = pl.pallas_call(
        _attn_kernel,
        grid=(N, H, Tqp // tq),
        in_specs=[
            pl.BlockSpec((1, 1, tq, Dh), lambda n, h, i: (n, h, i, 0)),
            pl.BlockSpec((1, 1, Tk, Dh), lambda n, h, i: (n, h, 0, 0)),
            pl.BlockSpec((1, 1, Tk, Dh), lambda n, h, i: (n, h, 0, 0)),
            pl.BlockSpec((tq, Tk), lambda n, h, i: (i, 0)),        # shared mask
            pl.BlockSpec((1, 1, Tk), lambda n, h, i: (n, 0, 0)),   # per-batch pad
        ],
        out_specs=pl.BlockSpec((1, 1, tq, Dh), lambda n, h, i: (n, h, i, 0)),
        out_shape=jax.ShapeDtypeStruct((N, H, Tqp, Dh), jnp.bfloat16),
        compiler_params=pltpu.CompilerParams(
            dimension_semantics=("parallel", "parallel", "parallel"),
            vmem_limit_bytes=_VMEM_LIMIT),
    )(q, k, v, attn_bias, pad_bias)
    if Tqp != Tq:
        out = out[:, :, :Tq]
    return out


# --------------------------- transformer glue --------------------------------

def multi_head_attention(query, kv, p, num_heads, attn_mask, key_pad_mask, self_attn):
    """query: (N, Tq, E), kv: (N, Tk, E)  ->  (N*Tq, E) pre-out-proj context."""
    N, Tq, E = query.shape
    Tk = kv.shape[1]
    H = num_heads
    Dh = E // H

    q2d = query.reshape(N * Tq, E)
    if self_attn:
        # fused QKV projection: one matmul over (E, 3E)
        qkv = linear(q2d, p["in_proj_w"], p["in_proj_b"])
        q, k, v = jnp.split(qkv, 3, axis=-1)
        k = k.reshape(N, Tk, E)
        v = v.reshape(N, Tk, E)
    else:
        q = linear(q2d, p["in_proj_w"][:, :E], p["in_proj_b"][:E])
        kvp = linear(kv.reshape(N * Tk, E), p["in_proj_w"][:, E:], p["in_proj_b"][E:])
        k, v = jnp.split(kvp, 2, axis=-1)
        k = k.reshape(N, Tk, E)
        v = v.reshape(N, Tk, E)
    q = q.reshape(N, Tq, E)

    # TODO(synk): feed the fused QKV buffer straight into sdpa via BlockSpec
    # offsets; kept as XLA split+transpose since the head-split layout needs a
    # (T,H)->(H,T) transpose anyway (cheap relayout plumbing).
    def split_heads(x):
        n, t, _ = x.shape
        return x.reshape(n, t, H, Dh).transpose(0, 2, 1, 3)   # (N, H, T, Dh)

    qh, kh, vh = split_heads(q), split_heads(k), split_heads(v)

    if attn_mask is None:
        attn_bias = jnp.zeros((Tq, Tk), jnp.float32)
    elif attn_mask.dtype == jnp.bool_:
        attn_bias = jnp.where(attn_mask, _NEG_INF, 0.0).astype(jnp.float32)
    else:
        attn_bias = jnp.maximum(attn_mask.astype(jnp.float32), _NEG_INF)
    if key_pad_mask is None:
        pad_bias = jnp.zeros((N, 1, Tk), jnp.float32)
    elif key_pad_mask.dtype == jnp.bool_:
        pad_bias = jnp.where(key_pad_mask, _NEG_INF, 0.0).astype(jnp.float32).reshape(N, 1, Tk)
    else:
        pad_bias = jnp.maximum(key_pad_mask.astype(jnp.float32), _NEG_INF).reshape(N, 1, Tk)

    o = sdpa(qh, kh, vh, attn_bias, pad_bias)                  # (N, H, Tq, Dh)
    return o.transpose(0, 2, 1, 3).reshape(N * Tq, E)          # (N*Tq, E)


def encoder_layer(x, p, H, src_pad_mask):
    N, T, E = x.shape
    x2d = x.reshape(N * T, E)
    a2d = multi_head_attention(x, x, p["self_attn"], H, None, src_pad_mask, self_attn=True)
    # fused out-proj + residual-add + LayerNorm (post-LN)
    x2d = linear_res_ln(a2d, p["self_attn"]["out_proj_w"], p["self_attn"]["out_proj_b"],
                        x2d, p["norm1_g"], p["norm1_b"])
    # fused FFN (F-tiled) + residual-add + LayerNorm
    x2d = ffn_res_ln(x2d, p["lin1_w"], p["lin1_b"], p["lin2_w"], p["lin2_b"],
                     p["norm2_g"], p["norm2_b"])
    return x2d.reshape(N, T, E)


def decoder_layer(x, mem, p, H, tgt_mask, tgt_pad_mask, mem_pad_mask):
    N, T, E = x.shape
    x2d = x.reshape(N * T, E)
    a2d = multi_head_attention(x, x, p["self_attn"], H, tgt_mask, tgt_pad_mask, self_attn=True)
    x2d = linear_res_ln(a2d, p["self_attn"]["out_proj_w"], p["self_attn"]["out_proj_b"],
                        x2d, p["norm1_g"], p["norm1_b"])
    x = x2d.reshape(N, T, E)
    a2d = multi_head_attention(x, mem, p["cross_attn"], H, None, mem_pad_mask, self_attn=False)
    x2d = linear_res_ln(a2d, p["cross_attn"]["out_proj_w"], p["cross_attn"]["out_proj_b"],
                        x2d, p["norm2_g"], p["norm2_b"])
    x2d = ffn_res_ln(x2d, p["lin1_w"], p["lin1_b"], p["lin2_w"], p["lin2_b"],
                     p["norm3_g"], p["norm3_b"])
    return x2d.reshape(N, T, E)


def transformer_forward(params, src_ids, tgt_ids,
                        tgt_mask=None, src_pad_mask=None, tgt_pad_mask=None):
    E = params["dim_model"]
    H = params["num_heads"]

    # embedding * sqrt(dim_model)
    src = jnp.take(params["embedding"], src_ids, axis=0) * math.sqrt(E)  # (N, S, E)
    tgt = jnp.take(params["embedding"], tgt_ids, axis=0) * math.sqrt(E)  # (N, T, E)

    # Positional encoding applied BEFORE the permute (exactly as in the PyTorch
    # code): pos_encoding[:size(0)] indexes the *batch* dim and broadcasts over
    # the sequence dim -> quirk reproduced on purpose.
    pe = params["pos_encoding"]                          # (max_len, 1, E)
    src = (src + pe[: src.shape[0]]).astype(jnp.bfloat16)
    tgt = (tgt + pe[: tgt.shape[0]]).astype(jnp.bfloat16)
    # dropout(p) == identity (inference semantics)

    mem = src
    for lp in params["encoder_layers"]:
        mem = encoder_layer(mem, lp, H, src_pad_mask)
    mem = layer_norm(mem.reshape(-1, E), params["enc_norm_g"],
                     params["enc_norm_b"]).reshape(mem.shape)

    out = tgt
    for lp in params["decoder_layers"]:
        out = decoder_layer(out, mem, lp, H, tgt_mask, tgt_pad_mask, None)
    out = layer_norm(out.reshape(-1, E), params["dec_norm_g"],
                     params["dec_norm_b"]).reshape(out.shape)

    N, T, _ = out.shape
    logits = linear(out.reshape(N * T, E), params["out_w"], params["out_b"],
                    out_dtype=jnp.float32)
    logits = logits.reshape(N, T, params["num_tokens"])
    return jnp.transpose(logits, (1, 0, 2))              # (T, N, num_tokens)


def get_tgt_mask(size):
    tril = jnp.tril(jnp.ones((size, size), jnp.float32)) == 1.0
    return jnp.where(tril, 0.0, -jnp.inf).astype(jnp.float32)


# ---------------------------- parameter init --------------------------------

def init_params(key, num_tokens, dim_model, num_heads,
                num_encoder_layers, num_decoder_layers,
                dim_feedforward=2048, max_len=5000):
    keys = iter(jax.random.split(key, 4096))

    def w(shape, scale=0.02):
        return (scale * jax.random.normal(next(keys), shape)).astype(jnp.float32)

    def zeros(shape):
        return jnp.zeros(shape, jnp.float32)

    def ones(shape):
        return jnp.ones(shape, jnp.float32)

    def attn_params():
        return {
            "in_proj_w": w((dim_model, 3 * dim_model)),   # stored (in, out)
            "in_proj_b": zeros((3 * dim_model,)),
            "out_proj_w": w((dim_model, dim_model)),
            "out_proj_b": zeros((dim_model,)),
        }

    def enc_layer():
        return {
            "self_attn": attn_params(),
            "lin1_w": w((dim_model, dim_feedforward)),
            "lin1_b": zeros((dim_feedforward,)),
            "lin2_w": w((dim_feedforward, dim_model)),
            "lin2_b": zeros((dim_model,)),
            "norm1_g": ones((dim_model,)), "norm1_b": zeros((dim_model,)),
            "norm2_g": ones((dim_model,)), "norm2_b": zeros((dim_model,)),
        }

    def dec_layer():
        return {
            "self_attn": attn_params(),
            "cross_attn": attn_params(),
            "lin1_w": w((dim_model, dim_feedforward)),
            "lin1_b": zeros((dim_feedforward,)),
            "lin2_w": w((dim_feedforward, dim_model)),
            "lin2_b": zeros((dim_model,)),
            "norm1_g": ones((dim_model,)), "norm1_b": zeros((dim_model,)),
            "norm2_g": ones((dim_model,)), "norm2_b": zeros((dim_model,)),
            "norm3_g": ones((dim_model,)), "norm3_b": zeros((dim_model,)),
        }

    # sinusoidal positional encoding buffer, exactly as in PositionalEncoding
    pos = jnp.arange(max_len, dtype=jnp.float32)[:, None]
    div = jnp.exp(jnp.arange(0, dim_model, 2, dtype=jnp.float32)
                  * (-math.log(10000.0) / dim_model))
    pe = jnp.zeros((max_len, dim_model), jnp.float32)
    pe = pe.at[:, 0::2].set(jnp.sin(pos * div))
    pe = pe.at[:, 1::2].set(jnp.cos(pos * div))
    pe = pe[:, None, :]                                    # (max_len, 1, E)

    return {
        "num_tokens": num_tokens,
        "dim_model": dim_model,
        "num_heads": num_heads,
        "embedding": w((num_tokens, dim_model), scale=1.0),
        "pos_encoding": pe,
        "encoder_layers": [enc_layer() for _ in range(num_encoder_layers)],
        "decoder_layers": [dec_layer() for _ in range(num_decoder_layers)],
        "enc_norm_g": ones((dim_model,)), "enc_norm_b": zeros((dim_model,)),
        "dec_norm_g": ones((dim_model,)), "dec_norm_b": zeros((dim_model,)),
        "out_w": w((dim_model, num_tokens)),
        "out_b": zeros((num_tokens,)),
    }


def prepare_params(p):
    """One-time prep: cast matmul weights to bf16 (halves HBM/DMA bytes and
    removes in-kernel casts) and fold 1/sqrt(Dh) into the Q projection."""
    E = p["dim_model"]
    H = p["num_heads"]
    scale = 1.0 / math.sqrt(E // H)

    def prep_attn(a):
        w = a["in_proj_w"].astype(jnp.float32)
        b = a["in_proj_b"].astype(jnp.float32)
        w = w.at[:, :E].multiply(scale)        # fold attention scale into Wq
        b = b.at[:E].multiply(scale)
        return {
            "in_proj_w": w.astype(jnp.bfloat16),
            "in_proj_b": b,
            "out_proj_w": a["out_proj_w"].astype(jnp.bfloat16),
            "out_proj_b": a["out_proj_b"].astype(jnp.float32),
        }

    def prep_layer(layer, is_dec):
        out = {
            "self_attn": prep_attn(layer["self_attn"]),
            "lin1_w": layer["lin1_w"].astype(jnp.bfloat16), "lin1_b": layer["lin1_b"],
            "lin2_w": layer["lin2_w"].astype(jnp.bfloat16), "lin2_b": layer["lin2_b"],
            "norm1_g": layer["norm1_g"], "norm1_b": layer["norm1_b"],
            "norm2_g": layer["norm2_g"], "norm2_b": layer["norm2_b"],
        }
        if is_dec:
            out["cross_attn"] = prep_attn(layer["cross_attn"])
            out["norm3_g"] = layer["norm3_g"]
            out["norm3_b"] = layer["norm3_b"]
        return out

    return {
        "num_tokens": p["num_tokens"], "dim_model": E, "num_heads": H,
        "embedding": p["embedding"], "pos_encoding": p["pos_encoding"],
        "encoder_layers": [prep_layer(l, False) for l in p["encoder_layers"]],
        "decoder_layers": [prep_layer(l, True) for l in p["decoder_layers"]],
        "enc_norm_g": p["enc_norm_g"], "enc_norm_b": p["enc_norm_b"],
        "dec_norm_g": p["dec_norm_g"], "dec_norm_b": p["dec_norm_b"],
        "out_w": p["out_w"].astype(jnp.bfloat16), "out_b": p["out_b"],
    }


# --------------------------------- main --------------------------------------

if __name__ == "__main__":
    num_tokens = 16
    dim_model = 32
    num_heads = 4
    num_enc = 2
    num_dec = 2
    batch = 2
    src_len = 8
    tgt_len = 8

    key = jax.random.PRNGKey(0)
    kp, ks, kt = jax.random.split(key, 3)

    params = prepare_params(
        init_params(kp, num_tokens, dim_model, num_heads, num_enc, num_dec))

    src_ids = jax.random.randint(ks, (batch, src_len), 0, num_tokens, dtype=jnp.int32)
    tgt_ids = jax.random.randint(kt, (batch, tgt_len), 0, num_tokens, dtype=jnp.int32)
    tgt_mask = get_tgt_mask(tgt_len)

    out = transformer_forward(params, src_ids, tgt_ids, tgt_mask=tgt_mask)
    out = jax.block_until_ready(out)

    assert out.shape == (tgt_len, batch, num_tokens), out.shape
    assert bool(jnp.all(jnp.isfinite(out)))
    print("KERNEL_OK")
</pallas_src>

<mosaic_0001>
module attributes {stable_mosaic.version = 11 : i64} {
  func.func @_matmul_kernel(%arg0: i32, %arg1: i32, %arg2: i32, %arg3: memref<16x128xbf16, #tpu.memory_space<vmem>>, %arg4: memref<128x128xbf16, #tpu.memory_space<vmem>>, %arg5: memref<1x128xf32, #tpu.memory_space<vmem>>, %arg6: memref<16x128xbf16, #tpu.memory_space<vmem>>, %arg7: memref<16x128xf32, #tpu.memory_space<vmem>>) attributes {dimension_semantics = [#tpu.dimension_semantics<parallel>, #tpu.dimension_semantics<parallel>, #tpu.dimension_semantics<arbitrary>], iteration_bounds = array<i64: 1, 1, 1>, scalar_prefetch = 0 : i64, scratch_operands = 1 : i64, tpu.core_type = #tpu.core_type<tc>, window_params = [{transform_indices = @transform_0, window_bounds = array<i64: 16, 128>}, {transform_indices = @transform_1, window_bounds = array<i64: 128, 128>}, {transform_indices = @transform_2, window_bounds = array<i64: 1, 128>}, {transform_indices = @transform_3, window_bounds = array<i64: 16, 128>}]} {
    %c0_i32 = arith.constant 0 : i32
    %0 = arith.cmpi eq, %arg2, %c0_i32 : i32
    %1 = arith.extui %0 : i1 to i32
    %c0_i32_0 = arith.constant 0 : i32
    %2 = arith.cmpi ne, %1, %c0_i32_0 : i32
    scf.if %2 {
      %cst_10 = arith.constant 0.000000e+00 : f32
      %12 = vector.broadcast %cst_10 : f32 to vector<16x128xf32>
      %c0_11 = arith.constant 0 : index
      %c0_12 = arith.constant 0 : index
      %13 = vector.load %arg7[%c0_11, %c0_12] : memref<16x128xf32, #tpu.memory_space<vmem>>, vector<16x128xf32>
      tpu.vector_store %arg7[%c0_11, %c0_12], %12 {strides = array<i32>} : memref<16x128xf32, #tpu.memory_space<vmem>>, vector<16x128xf32>,
    } else {
    }
    %c0 = arith.constant 0 : index
    %c0_1 = arith.constant 0 : index
    %3 = vector.load %arg7[%c0, %c0_1] : memref<16x128xf32, #tpu.memory_space<vmem>>, vector<16x128xf32>
    %c0_2 = arith.constant 0 : index
    %c0_3 = arith.constant 0 : index
    %4 = vector.load %arg3[%c0_2, %c0_3] : memref<16x128xbf16, #tpu.memory_space<vmem>>, vector<16x128xbf16>
    %c0_4 = arith.constant 0 : index
    %c0_5 = arith.constant 0 : index
    %5 = vector.load %arg4[%c0_4, %c0_5] : memref<128x128xbf16, #tpu.memory_space<vmem>>, vector<128x128xbf16>
    %cst = arith.constant dense<0.000000e+00> : vector<16x128xf32>
    %6 = tpu.matmul %4, %5, %cst {dimension_numbers = #tpu.dot_dimension_numbers<[1], [0], [0], [1], [0, 0, 1, 1], [], []>} : vector<16x128xbf16>, vector<128x128xbf16>, vector<16x128xf32> -> vector<16x128xf32>
    %7 = arith.addf %3, %6 : vector<16x128xf32>
    %c0_6 = arith.constant 0 : index
    %c0_7 = arith.constant 0 : index
    %8 = vector.load %arg7[%c0_6, %c0_7] : memref<16x128xf32, #tpu.memory_space<vmem>>, vector<16x128xf32>
    tpu.vector_store %arg7[%c0_6, %c0_7], %7 {strides = array<i32>} : memref<16x128xf32, #tpu.memory_space<vmem>>, vector<16x128xf32>,
    %c0_i32_8 = arith.constant 0 : i32
    %9 = arith.cmpi eq, %arg2, %c0_i32_8 : i32
    %10 = arith.extui %9 : i1 to i32
    %c0_i32_9 = arith.constant 0 : i32
    %11 = arith.cmpi ne, %10, %c0_i32_9 : i32
    scf.if %11 {
      %c0_10 = arith.constant 0 : index
      %c0_11 = arith.constant 0 : index
      %12 = vector.load %arg7[%c0_10, %c0_11] : memref<16x128xf32, #tpu.memory_space<vmem>>, vector<16x128xf32>
      %c0_12 = arith.constant 0 : index
      %c0_13 = arith.constant 0 : index
      %13 = vector.load %arg5[%c0_12, %c0_13] : memref<1x128xf32, #tpu.memory_space<vmem>>, vector<1x128xf32>
      %14 = vector.broadcast %13 : vector<1x128xf32> to vector<16x128xf32>
      %15 = arith.addf %12, %14 : vector<16x128xf32>
      %16 = arith.truncf %15 : vector<16x128xf32> to vector<16x128xbf16>
      %c0_14 = arith.constant 0 : index
      %c0_15 = arith.constant 0 : index
      %17 = vector.load %arg6[%c0_14, %c0_15] : memref<16x128xbf16, #tpu.memory_space<vmem>>, vector<16x128xbf16>
      tpu.vector_store %arg6[%c0_14, %c0_15], %16 {strides = array<i32>} : memref<16x128xbf16, #tpu.memory_space<vmem>>, vector<16x128xbf16>,
    } else {
    }
    return
  }
  func.func @transform_0(%arg0: i32, %arg1: i32, %arg2: i32) -> (i32, i32) {
    %c0_i32 = arith.constant 0 : i32
    return %arg0, %arg2 : i32, i32
  }
  func.func @transform_1(%arg0: i32, %arg1: i32, %arg2: i32) -> (i32, i32) {
    %c0_i32 = arith.constant 0 : i32
    return %arg2, %arg1 : i32, i32
  }
  func.func @transform_2(%arg0: i32, %arg1: i32, %arg2: i32) -> (i32, i32) {
    %c0_i32 = arith.constant 0 : i32
    %c0_i32_0 = arith.constant 0 : i32
    return %c0_i32, %arg1 : i32, i32
  }
  func.func @transform_3(%arg0: i32, %arg1: i32, %arg2: i32) -> (i32, i32) {
    %c0_i32 = arith.constant 0 : i32
    return %arg0, %arg1 : i32, i32
  }
}

</mosaic_0001>

<bundles_post_ra>
// kernel: tpu_custom_call.1
= control target key start
LH: loop header
LB: loop body
LE: loop exit
PB: predicated region body
PF: predicated region fallthrough
CT: control target
= control target key end

     0   :  { %8 = vsyncpa [#allocation4], 0  ;;  %s422_s0 = inlined_call_operand.hbm [shape: bf16[16,128], index: 0, kind: input, shape index: {}]   ;;  %s423_s1 = inlined_call_operand.hbm [shape: bf16[128,128], index: 1, kind: input, shape index: {}]   ;;  %s424_s2 = inlined_call_operand.vmem [shape: f32[1,128], index: 2, kind: input, shape index: {}]   ;;  %s425_s3 = inlined_call_operand.hbm [shape: bf16[16,128], index: 3, kind: output, shape index: {}]  }
   0x1   :  { %9 = vsyncpa [#allocation7], 0 }
   0x2   :  { %10 = vsyncpa [#allocation5], 0  ;;  %s347_s12 = smov [#allocation3]   ;;  %s275_s16 = scalar_lea.hbm %s422_s0, 128 }
   0x3   :  { %s16_s13 = sshll.u32 %s347_s12, 4  ;;  %p276_p0 = scmp.ne.s32.totalorder %s422_s0, %s275_s16  ;;  %s17_s13 = int_to_ptr.vmem [resolvable:$true] %s16_s13 }
   0x4   :  { %p279_p1 = scmp.lt.u32.totalorder %s275_s16, %s422_s0 }
   0x6   :  { %p281_p2 = pnand %p279_p1, %p276_p0 }
   0x8   :  { %284 = shalt.err (!%p281_p2)
}
   0x9   :  { %s285_s21 = scalar_lea.vmem %s17_s13, 128  ;;  %p290_p4 = scmp.lt.s32.totalorder %s17_s13, %s17_s13 }
   0xa   :  { %p286_p3 = scmp.ne.s32.totalorder %s17_s13, %s285_s21  ;;  %p291_p5 = scmp.lt.s32.totalorder %s285_s21, %s285_s21 }
   0xc   :  { %p292_p6 = por %p291_p5, %p290_p4 }
   0xe   :  { %p293_p7 = pnand %p292_p6, %p286_p3 }
  0x10   :  { %296 = shalt.err (!%p293_p7)
}
  0x11   :  { %s348_s22 = smov 64   ;;  %s349_s23 = smov 4  }
  0x12   :  { %22 = dma.hbm_to_vmem [thread:$0]  %s422_s0, 128, %s17_s13, [#allocation4], %s348_s22, %s348_s22, %s349_s23  }
  0x13   :  { %s350_s26 = smov [#allocation6]   ;;  %s297_s30 = scalar_lea.hbm %s423_s1, 1024 }
  0x14   :  { %s28_s27 = sshll.u32 %s350_s26, 4  ;;  %p298_p8 = scmp.ne.s32.totalorder %s423_s1, %s297_s30  ;;  %s29_s27 = int_to_ptr.vmem [resolvable:$true] %s28_s27 }
  0x15   :  { %p301_p9 = scmp.lt.u32.totalorder %s297_s30, %s423_s1 }
  0x17   :  { %p303_p10 = pnand %p301_p9, %p298_p8 }
  0x19   :  { %306 = shalt.err (!%p303_p10)
}
  0x1a   :  { %s307_s8 = scalar_lea.vmem %s29_s27, 1024  ;;  %p312_p12 = scmp.lt.s32.totalorder %s29_s27, %s29_s27 }
  0x1b   :  { %p308_p11 = scmp.ne.s32.totalorder %s29_s27, %s307_s8  ;;  %p313_p13 = scmp.lt.s32.totalorder %s307_s8, %s307_s8 }
  0x1d   :  { %p314_p0 = por %p313_p13, %p312_p12 }
  0x1f   :  { %p315_p1 = pnand %p314_p0, %p308_p11 }
  0x21   :  { %318 = shalt.err (!%p315_p1)
}
  0x22   :  { %34 = dma.hbm_to_vmem [thread:$0]  %s423_s1, 1024, %s29_s27, [#allocation7], %s348_s22, %s348_s22, %s349_s23  }
  0x23   :  { %341 = dma.done.wait [#allocation4], 128  }
  0x24   :  { %342 = vsyncadd [#allocation4], 4294967168 }
  0x25   :  { %343 = dma.done.wait [#allocation7], 1024  }
  0x26   :  { %344 = vsyncadd [#allocation7], 4294966272  ;;  %v351_v0 = vmov 0.0   ;;  %vm352_vm0 = vmmov 0   ;;  %v266_v1 = vld [vmem:[#allocation6] sm:$0xff]   ;;  %v267_v2 = vld [vmem:[#allocation6 + $0x8] sm:$0xff]  }
  0x27   :  { %239 = vmatprep.subr.bf16.mxu0 %v351_v0  ;;  %255 = vmatprep.mubr.msk.bf16.mxu0 %vm352_vm0, %v351_v0  ;;  %v268_v3 = vld [vmem:[#allocation6 + $0x10] sm:$0xff]   ;;  %v269_v4 = vld [vmem:[#allocation6 + $0x18] sm:$0xff]   ;;  %v270_v5 = vld [vmem:[#allocation6 + $0x20] sm:$0xff]   ;;  %s353_s11 = smov [#allocation8]  }
  0x28   :  { %240 = vmatpush3.bf16.msra.mxu0 %v266_v1  ;;  %v271_v6 = vld [vmem:[#allocation6 + $0x28] sm:$0xff]   ;;  %v272_v7 = vld [vmem:[#allocation6 + $0x30] sm:$0xff]   ;;  %v273_v8 = vld [vmem:[#allocation6 + $0x38] sm:$0xff]   ;;  %s198_s12 = sshll.u32 %s353_s11, 4  ;;  %s199_s12 = int_to_ptr.vmem [resolvable:$true] %s198_s12 }
  0x29   :  { %241 = vmatprep.subr.bf16.mxu0 %v351_v0  ;;  %v274_v9 = vld [vmem:[#allocation3] sm:$0xff]   ;;  %s319_s13 = scalar_lea.vmem %s199_s12, 128  ;;  %p324_p3 = scmp.lt.s32.totalorder %s199_s12, %s199_s12 }
  0x2a   :  { %v220_v11 = vld [vmem:[%s424_s2] ss:$0 sm:$0xff]  ;;  %p320_p2 = scmp.ne.s32.totalorder %s199_s12, %s319_s13  ;;  %p325_p4 = scmp.lt.s32.totalorder %s319_s13, %s319_s13 }
  0x2c   :  { %242 = vmatpush3.bf16.msra.mxu0 %v267_v2  ;;  %p326_p5 = por %p325_p4, %p324_p3 }
  0x2d   :  { %243 = vmatprep.subr.bf16.mxu0 %v351_v0 }
  0x2e   :  { %p327_p6 = pnand %p326_p5, %p320_p2 }
  0x30   :  { %244 = vmatpush3.bf16.msra.mxu0 %v268_v3 }
  0x31   :  { %245 = vmatprep.subr.bf16.mxu0 %v351_v0 }
  0x34   :  { %246 = vmatpush3.bf16.msra.mxu0 %v269_v4 }
  0x35   :  { %247 = vmatprep.subr.bf16.mxu0 %v351_v0 }
  0x38   :  { %248 = vmatpush3.bf16.msra.mxu0 %v270_v5 }
  0x39   :  { %249 = vmatprep.subr.bf16.mxu0 %v351_v0 }
  0x3c   :  { %250 = vmatpush3.bf16.msra.mxu0 %v271_v6 }
  0x3d   :  { %251 = vmatprep.subr.bf16.mxu0 %v351_v0 }
  0x40   :  { %252 = vmatpush3.bf16.msra.mxu0 %v272_v7 }
  0x41   :  { %253 = vmatprep.subr.bf16.mxu0 %v351_v0 }
  0x44   :  { %254 = vmatpush3.bf16.msra.mxu0 %v273_v8 }
  0x47   :  { %256 = vmatmul.mubr.bf16.vlgmr.msra.gmra.mrb[0].mxu0 %v274_v9 }
 0x11a   :  { %v158_v10 = vpop.f32.mrb[0].mxu0 }
 0x11b   :  { %v257_v12 = vpop.f32.mrb[1].mxu0  ;;  %v181_v14 = vadd.f32 %v220_v11, %v158_v10 }
 0x11c   :  { %v161_v13 = vpop.f32.mrb[2].mxu0 }
 0x11d   :  { %v182_v15 = vadd.f32 %v220_v11, %v161_v13  ;;  %v258_v16 = vpop.f32.mrb[3].mxu0 }
 0x11f   :  { %v228_v17 = vpack.c.bf16 %v182_v15, %v181_v14 }
 0x121   :  { %229 = vst [vmem:[#allocation8] sm:$0xff] %v228_v17  }
 0x122   :  { %330 = shalt.err (!%p327_p6)
}
 0x123   :  { %s331_s2 = scalar_lea.hbm %s425_s3, 128 }
 0x124   :  { %p332_p7 = scmp.ne.s32.totalorder %s425_s3, %s331_s2  ;;  %p335_p8 = scmp.lt.u32.totalorder %s331_s2, %s425_s3 }
 0x126   :  { %p337_p9 = pnand %p335_p8, %p332_p7 }
 0x128   :  { %340 = shalt.err (!%p337_p9)
}
 0x129   :  { %204 = dma.vmem_to_hbm [thread:$0]  %s199_s12, 128, %s425_s3, [#allocation5], %s348_s22, %s348_s22, %s349_s23  }
 0x12a   :  { %345 = dma.done.wait [#allocation5], 128  }
 0x12b   :  { %346 = vsyncadd [#allocation5], 4294967168 }
 0x12c   :  { %208 = vsyncpa [#allocation4], 1 }
 0x12d   :  { %209 = vsyncpa [#allocation7], 1 }
 0x12e   :  { %210 = vsyncpa [#allocation5], 1 }

</bundles_post_ra>
